<compile_context>
chip_gen: v7x
topology: tpu7x:2x2x1
jax: 0.10.0
libtpu: 0.0.40
codegen_flags: <defaults>
</compile_context>

<pallas_src>
import functools

import jax
import jax.numpy as jnp
from jax.experimental import pallas as pl
from jax.experimental.pallas import tpu as pltpu


def _contrastive_loss_kernel(margin: float, batch: int, tb: int):
    def kernel(anchor_ref, positive_ref, label_ref, out_ref, acc_ref):
        i = pl.program_id(0)

        @pl.when(i == 0)
        def _():
            acc_ref[...] = jnp.zeros_like(acc_ref)

        a = anchor_ref[...].astype(jnp.float32)       # (TB, D)
        p = positive_ref[...].astype(jnp.float32)     # (TB, D)
        lab = label_ref[...].astype(jnp.float32)      # (TB, 1)

        diff = a - p
        sq_dist = jnp.sum(diff * diff, axis=1, keepdims=True)    # (TB, 1)
        distance = jnp.sqrt(sq_dist)                              # (TB, 1)

        positive_loss = (1.0 - lab) * distance ** 2
        negative_loss = lab * jnp.maximum(margin - distance, 0.0) ** 2
        per_row = positive_loss + negative_loss                   # (TB, 1)

        # Mask out rows past the true batch size (partial last tile). Use
        # where (not multiply) so garbage/NaN padding cannot leak in.
        row = i * tb + jax.lax.broadcasted_iota(jnp.int32, (tb, 1), 0)
        per_row = jnp.where(row < batch, per_row, 0.0)

        acc_ref[...] += jnp.sum(per_row, keepdims=True)           # (1, 1)

        @pl.when(i == pl.num_programs(0) - 1)
        def _():
            # 0.5 * mean over the true batch size, single output store.
            out_ref[...] = (0.5 / batch) * acc_ref[...]

    return kernel


def _choose_block_rows(B: int, D: int, itemsize: int,
                       target_bytes: int = 4 * 1024 * 1024) -> int:
    """Pick a batch tile: multiple of 8, <= B, ~<= target_bytes per input block."""
    if B <= 8:
        return B                       # full-array dim satisfies the (8,128) rule
    tb = max(8, target_bytes // max(1, D * itemsize))
    tb = min(int(tb), B)
    tb -= tb % 8
    return max(8, tb)


@functools.partial(jax.jit, static_argnames=("margin", "block_rows"))
def contrastive_loss(anchor, positive, label, margin: float = 0.2,
                     block_rows: int | None = None):
    """Pallas TPU implementation of ContrastiveLoss.forward.

    anchor, positive: (B, D) arrays (any float dtype; cast to f32 in-kernel)
    label:            (B,)   array (0 = similar pair, 1 = dissimilar pair)
    returns:          scalar float32 loss
    """
    B, D = anchor.shape
    itemsize = jnp.dtype(anchor.dtype).itemsize

    tb = block_rows if block_rows is not None else _choose_block_rows(B, D, itemsize)
    tb = min(tb, B) if B <= 8 else tb
    num_steps = pl.cdiv(B, tb)

    # Label is tiny; reshape/cast in the wrapper. Anchor/positive stay in
    # their native dtype (no wrapper up-cast => no extra HBM traffic).
    label2d = label.reshape(B, 1).astype(jnp.float32)

    block_bytes = tb * D * itemsize
    vmem_limit = int(min(60 * 1024 * 1024,
                         max(32 * 1024 * 1024, 6 * block_bytes)))

    cost = pl.CostEstimate(
        flops=3 * B * D + 8 * B,
        transcendentals=B,                       # the per-row sqrt
        bytes_accessed=int(2 * B * D * itemsize + B * 4 + 4),
    )

    out = pl.pallas_call(
        _contrastive_loss_kernel(float(margin), B, tb),
        out_shape=jax.ShapeDtypeStruct((1, 1), jnp.float32),
        grid=(num_steps,),
        in_specs=[
            pl.BlockSpec((tb, D), lambda i: (i, 0)),
            pl.BlockSpec((tb, D), lambda i: (i, 0)),
            pl.BlockSpec((tb, 1), lambda i: (i, 0)),
        ],
        out_specs=pl.BlockSpec((1, 1), lambda i: (0, 0)),
        scratch_shapes=[pltpu.VMEM((1, 1), jnp.float32)],
        compiler_params=pltpu.CompilerParams(
            dimension_semantics=("arbitrary",),   # accumulation / revisited output
            vmem_limit_bytes=vmem_limit,
        ),
        cost_estimate=cost,
    )(anchor, positive, label2d)

    return out[0, 0]


def _reference(anchor, positive, label, margin):
    """Pure-JAX mirror of the PyTorch forward."""
    dist = jnp.sqrt(jnp.sum((anchor - positive) ** 2, axis=1))
    pos_l = (1.0 - label) * dist ** 2
    neg_l = label * jnp.maximum(margin - dist, 0.0) ** 2
    return 0.5 * jnp.mean(pos_l + neg_l)


if __name__ == "__main__":
    key = jax.random.PRNGKey(0)
    k1, k2, k3 = jax.random.split(key, 3)

    # Test 1: f32 inputs, batch divisible by the tile; force TB=8 so the grid
    # has 2 steps and the cross-step accumulator path is exercised.
    B, D = 16, 32
    anchor = jax.random.normal(k1, (B, D), dtype=jnp.float32)
    positive = jax.random.normal(k2, (B, D), dtype=jnp.float32)
    label = jax.random.bernoulli(k3, p=0.5, shape=(B,)).astype(jnp.float32)

    loss = contrastive_loss(anchor, positive, label, margin=0.2, block_rows=8)
    jax.block_until_ready(loss)
    ref = _reference(anchor, positive, label, 0.2)
    assert jnp.allclose(loss, ref, rtol=1e-5, atol=1e-6), (loss, ref)

    # Test 2: bf16 inputs (native-dtype DMA path) and B not a multiple of the
    # tile (exercises the partial-tile mask).
    B2, D2 = 13, 32
    a2 = jax.random.normal(k1, (B2, D2), dtype=jnp.bfloat16)
    p2 = jax.random.normal(k2, (B2, D2), dtype=jnp.bfloat16)
    l2 = jax.random.bernoulli(k3, p=0.5, shape=(B2,)).astype(jnp.float32)

    loss2 = contrastive_loss(a2, p2, l2, margin=0.2)
    jax.block_until_ready(loss2)
    ref2 = _reference(a2.astype(jnp.float32), p2.astype(jnp.float32), l2, 0.2)
    assert jnp.allclose(loss2, ref2, rtol=1e-4, atol=1e-5), (loss2, ref2)

    print("KERNEL_OK")
</pallas_src>

<mosaic_0001>
module attributes {stable_mosaic.version = 11 : i64} {
  func.func @kernel(%arg0: i32, %arg1: memref<8x32xf32, #tpu.memory_space<vmem>>, %arg2: memref<8x32xf32, #tpu.memory_space<vmem>>, %arg3: memref<8x1xf32, #tpu.memory_space<vmem>>, %arg4: memref<1x1xf32, #tpu.memory_space<vmem>>, %arg5: memref<1x1xf32, #tpu.memory_space<vmem>>) attributes {dimension_semantics = [#tpu.dimension_semantics<arbitrary>], iteration_bounds = array<i64: 2>, scalar_prefetch = 0 : i64, scratch_operands = 1 : i64, tpu.core_type = #tpu.core_type<tc>, window_params = [{transform_indices = @transform_0, window_bounds = array<i64: 8, 32>}, {transform_indices = @transform_1, window_bounds = array<i64: 8, 32>}, {transform_indices = @transform_2, window_bounds = array<i64: 8, 1>}, {pipeline_mode = #tpu.pipeline_mode<synchronous>, transform_indices = @transform_3, window_bounds = array<i64: 1, 1>}]} {
    %c0_i32 = arith.constant 0 : i32
    %0 = arith.cmpi eq, %arg0, %c0_i32 : i32
    %1 = arith.extui %0 : i1 to i32
    %c0_i32_0 = arith.constant 0 : i32
    %2 = arith.cmpi ne, %1, %c0_i32_0 : i32
    scf.if %2 {
      %cst_16 = arith.constant 0.000000e+00 : f32
      %41 = vector.broadcast %cst_16 : f32 to vector<1x1xf32>
      %c0_17 = arith.constant 0 : index
      %c0_18 = arith.constant 0 : index
      %42 = vector.load %arg5[%c0_17, %c0_18] : memref<1x1xf32, #tpu.memory_space<vmem>>, vector<1x1xf32>
      tpu.vector_store %arg5[%c0_17, %c0_18], %41 {strides = array<i32>} : memref<1x1xf32, #tpu.memory_space<vmem>>, vector<1x1xf32>,
    } else {
    }
    %c0 = arith.constant 0 : index
    %c0_1 = arith.constant 0 : index
    %3 = vector.load %arg1[%c0, %c0_1] : memref<8x32xf32, #tpu.memory_space<vmem>>, vector<8x32xf32>
    %c0_2 = arith.constant 0 : index
    %c0_3 = arith.constant 0 : index
    %4 = vector.load %arg2[%c0_2, %c0_3] : memref<8x32xf32, #tpu.memory_space<vmem>>, vector<8x32xf32>
    %c0_4 = arith.constant 0 : index
    %c0_5 = arith.constant 0 : index
    %5 = vector.load %arg3[%c0_4, %c0_5] : memref<8x1xf32, #tpu.memory_space<vmem>>, vector<8x1xf32>
    %6 = arith.subf %3, %4 : vector<8x32xf32>
    %7 = arith.mulf %6, %6 : vector<8x32xf32>
    %cst = arith.constant dense<0.000000e+00> : vector<8xf32>
    %8 = vector.multi_reduction <add>, %7, %cst [1] : vector<8x32xf32> to vector<8xf32>
    %9 = vector.shape_cast %8 : vector<8xf32> to vector<8x1xf32>
    %10 = math.sqrt %9 : vector<8x1xf32>
    %cst_6 = arith.constant 1.000000e+00 : f32
    %11 = vector.broadcast %cst_6 : f32 to vector<8x1xf32>
    %12 = arith.subf %11, %5 : vector<8x1xf32>
    %13 = arith.mulf %10, %10 : vector<8x1xf32>
    %14 = arith.mulf %12, %13 : vector<8x1xf32>
    %cst_7 = arith.constant 2.000000e-01 : f32
    %15 = vector.broadcast %cst_7 : f32 to vector<8x1xf32>
    %16 = arith.subf %15, %10 : vector<8x1xf32>
    %cst_8 = arith.constant 0.000000e+00 : f32
    %17 = vector.broadcast %cst_8 : f32 to vector<8x1xf32>
    %18 = arith.maximumf %16, %17 : vector<8x1xf32>
    %19 = arith.mulf %18, %18 : vector<8x1xf32>
    %20 = arith.mulf %5, %19 : vector<8x1xf32>
    %21 = arith.addf %14, %20 : vector<8x1xf32>
    %c8_i32 = arith.constant 8 : i32
    %22 = arith.muli %arg0, %c8_i32 : i32
    %23 = tpu.iota {dimensions = array<i32: 0>} : vector<8x1xi32>
    %24 = vector.broadcast %22 : i32 to vector<8x1xi32>
    %25 = arith.addi %24, %23 : vector<8x1xi32>
    %c16_i32 = arith.constant 16 : i32
    %26 = vector.broadcast %c16_i32 : i32 to vector<8x1xi32>
    %27 = arith.cmpi slt, %25, %26 : vector<8x1xi32>
    %cst_9 = arith.constant 0.000000e+00 : f32
    %28 = vector.broadcast %cst_9 : f32 to vector<8x1xf32>
    %29 = arith.select %27, %21, %28 : vector<8x1xi1>, vector<8x1xf32>
    %c0_10 = arith.constant 0 : index
    %c0_11 = arith.constant 0 : index
    %30 = vector.load %arg5[%c0_10, %c0_11] : memref<1x1xf32, #tpu.memory_space<vmem>>, vector<1x1xf32>
    %31 = vector.shape_cast %29 : vector<8x1xf32> to vector<1x8x1xf32>
    %cst_12 = arith.constant dense<0.000000e+00> : vector<1xf32>
    %32 = vector.multi_reduction <add>, %31, %cst_12 [1, 2] : vector<1x8x1xf32> to vector<1xf32>
    %33 = vector.shape_cast %32 : vector<1xf32> to vector<1x1x1xf32>
    %34 = vector.extract %33[0, 0, 0] : f32 from vector<1x1x1xf32>
    %35 = vector.broadcast %34 : f32 to vector<1x1xf32>
    %36 = arith.addf %30, %35 : vector<1x1xf32>
    %c0_13 = arith.constant 0 : index
    %c0_14 = arith.constant 0 : index
    %37 = vector.load %arg5[%c0_13, %c0_14] : memref<1x1xf32, #tpu.memory_space<vmem>>, vector<1x1xf32>
    tpu.vector_store %arg5[%c0_13, %c0_14], %36 {strides = array<i32>} : memref<1x1xf32, #tpu.memory_space<vmem>>, vector<1x1xf32>,
    %c1_i32 = arith.constant 1 : i32
    %38 = arith.cmpi eq, %arg0, %c1_i32 : i32
    %39 = arith.extui %38 : i1 to i32
    %c0_i32_15 = arith.constant 0 : i32
    %40 = arith.cmpi ne, %39, %c0_i32_15 : i32
    scf.if %40 {
      %c0_16 = arith.constant 0 : index
      %c0_17 = arith.constant 0 : index
      %41 = vector.load %arg5[%c0_16, %c0_17] : memref<1x1xf32, #tpu.memory_space<vmem>>, vector<1x1xf32>
      %cst_18 = arith.constant 3.125000e-02 : f32
      %42 = vector.broadcast %cst_18 : f32 to vector<1x1xf32>
      %43 = arith.mulf %42, %41 : vector<1x1xf32>
      %c0_19 = arith.constant 0 : index
      %c0_20 = arith.constant 0 : index
      %44 = vector.load %arg4[%c0_19, %c0_20] : memref<1x1xf32, #tpu.memory_space<vmem>>, vector<1x1xf32>
      tpu.vector_store %arg4[%c0_19, %c0_20], %43 {strides = array<i32>} : memref<1x1xf32, #tpu.memory_space<vmem>>, vector<1x1xf32>,
    } else {
    }
    return
  }
  func.func @transform_0(%arg0: i32) -> (i32, i32) {
    %c0_i32 = arith.constant 0 : i32
    %c0_i32_0 = arith.constant 0 : i32
    return %arg0, %c0_i32 : i32, i32
  }
  func.func @transform_1(%arg0: i32) -> (i32, i32) {
    %c0_i32 = arith.constant 0 : i32
    %c0_i32_0 = arith.constant 0 : i32
    return %arg0, %c0_i32 : i32, i32
  }
  func.func @transform_2(%arg0: i32) -> (i32, i32) {
    %c0_i32 = arith.constant 0 : i32
    %c0_i32_0 = arith.constant 0 : i32
    return %arg0, %c0_i32 : i32, i32
  }
  func.func @transform_3(%arg0: i32) -> (i32, i32) {
    %c0_i32 = arith.constant 0 : i32
    %c0_i32_0 = arith.constant 0 : i32
    %c0_i32_1 = arith.constant 0 : i32
    return %c0_i32, %c0_i32_0 : i32, i32
  }
}

</mosaic_0001>

<bundles_post_ra>
// kernel: contrastive_loss.1
= control target key start
LH: loop header
LB: loop body
LE: loop exit
PB: predicated region body
PF: predicated region fallthrough
CT: control target
= control target key end

     0   :  { %8 = vsyncpa [#allocation4], 0  ;;  %s671_s0 = inlined_call_operand.vmem [shape: f32[16,32], index: 0, kind: input, shape index: {}]   ;;  %s672_s1 = inlined_call_operand.hbm [shape: f32[16,32], index: 1, kind: input, shape index: {}]   ;;  %s673_s2 = inlined_call_operand.vmem [shape: f32[16,1], index: 2, kind: input, shape index: {}]   ;;  %s674_s3 = inlined_call_operand.hbm [shape: f32[1,1], index: 3, kind: output, shape index: {}]  }
   0x1   :  { %10 = vsyncpa [#allocation4 + $0x1], 0 }
   0x2   :  { %11 = vsyncpa [#allocation5], 0  ;;  %s535_s12 = smov 0   ;;  %s537_s13 = smov 0  }
   0x3   :  { %s539_s14 = smov 0   ;;  %s541_s15 = smov 0  }
   0x4 LB: > { %s554_s16 = sadd.s32 4294967295, %s510_s15   ;;  %s557_s17 = sadd.s32 1, %s510_s15   ;;  %s510_s15 = sphi %s541_s15, %s682_s15   ;;  %s506_s14 = sphi %s539_s14, %s681_s14   ;;  %s502_s13 = sphi %s537_s13, %s680_s13   ;;  %s498_s12 = sphi %s535_s12, %s679_s12  }
   0x5   : > { %s47_s18 = ssub.s32 %s510_s15, %s557_s17  ;;  %s50_s19 = sadd.s32 1, %s506_s14 }
   0x6   : > { %p48_p0 = scmp.eq.s32.totalorder %s47_s18, 0  ;;  %p57_p1 = scmp.ne.s32.totalorder %s506_s14, %s502_s13 }
   0x7   : > { %p58_p2 = scmp.eq.s32.totalorder %s510_s15, 0  ;;  %p63_p3 = scmp.ne.s32.totalorder %s502_s13, %s498_s12 }
   0x8   : > { %s567_s20 = scalar_select %p48_p0, %s506_s14, %s50_s19  }
   0x9   : > { %p59_p4 = por %p58_p2, %p57_p1  ;;  %p64_p5 = scmp.eq.s32.totalorder %s554_s16, 0 }
   0xa   : > { %p377_p6 = scmp.lt.s32.totalorder %s510_s15, 2  ;;  %s141_s22 = sand.u32 1, %s506_s14  }
   0xb   : > { %p571_p7 = por %p64_p5, %p63_p3  ;;  %s352_s23 = sshll.u32 %s141_s22, 3 }
   0xc   : > { %s353_s24 = sshll.u32 %s510_s15, 7  ;;  %s145_s28 = scalar_lea.vmem [#allocation3], %s352_s23 }
   0xd   : > { %s580_s27 = scalar_lea.hbm %s672_s1, %s353_s24  ;;  %s152_s29 = sshll.u32 %s145_s28, 4  ;;  %s582_s29 = int_to_ptr.vmem [resolvable:$true] %s152_s29 }
   0xe   : > { %p584_p8 = pnand %p377_p6, %p59_p4  ;;  %s142_s4 = scalar_lea.sflag [#allocation4], %s141_s22 }
   0xf   : > { %s416_s5 = scalar_lea.hbm %s580_s27, 128  ;;  %s421_s8 = scalar_lea.hbm %s672_s1, 256 }
  0x10   : > { %p417_p11 = scmp.ne.s32.totalorder %s580_s27, %s416_s5  ;;  %p418_p12 = pneg %p584_p8 }
  0x11   : > { %p422_p1 = scmp.lt.u32.totalorder %s580_s27, %s672_s1  ;;  %p423_p2 = scmp.lt.u32.totalorder %s421_s8, %s416_s5 }
  0x12   : > { %p419_p13 = pnand %p418_p12, %p417_p11  ;;  %p425_p4 = scmp.lt.u32.totalorder %s416_s5, %s580_s27 }
  0x13   : > { %p424_p3 = por %p423_p2, %p422_p1 }
  0x14   : > { %p420_p0 = pneg %p419_p13 }
  0x15   : > { %p426_p5 = por %p425_p4, %p424_p3 }
  0x17   : > { %p427_p6 = pnand %p426_p5, %p420_p0 }
  0x19   : > { %430 = shalt.err (!%p427_p6)
}
  0x1a   : > { %s431_s11 = scalar_lea.vmem %s582_s29, 128  ;;  %s512_s12 = smov [#allocation3]  }
  0x1b   : > { %p432_p11 = scmp.ne.s32.totalorder %s582_s29, %s431_s11  ;;  %s436_s18 = sshll.u32 %s512_s12, 4  ;;  %s437_s18 = int_to_ptr.vmem [resolvable:$false] %s436_s18 }
  0x1c   : > { %s438_s19 = scalar_lea.vmem %s437_s18, 256  ;;  %p439_p10 = scmp.lt.s32.totalorder %s582_s29, %s437_s18 }
  0x1d   : > { %p434_p13 = pnand %p432_p11, %p418_p12  ;;  %p440_p1 = scmp.lt.s32.totalorder %s438_s19, %s431_s11 }
  0x1f   : > { %p435_p9 = pneg %p434_p13  ;;  %p441_p2 = por %p440_p1, %p439_p10 }
  0x21   : > { %p442_p3 = pnand %p441_p2, %p435_p9 }
  0x23   : > { %445 = shalt.err (!%p442_p3)
}
  0x24   : > { %376 = dma.hbm_to_vmem [thread:$0]  (!%p584_p8), %s580_s27, 128, %s582_s29, %s142_s4  }
  0x25   : > { %p677_p0 = scmp.lt.s32.totalorder %s510_s15, 3  ;;  %p678_p4 = scmp.ge.s32.totalorder %s510_s15, 1 }
  0x27   : > { %p165_p12 = pnand %p678_p4, %p677_p0 }
  0x28   : > { %s170_s22 = sand.u32 (!%p165_p12), 1, %s502_s13  }
  0x29   : > { %168 = sbr.rel (%p165_p12) target bundleno = 478 (0x1de), region = 32  ;;  %s355_s23 = sshll.u32 (!%p165_p12), %s170_s22, 3 }
  0x2a   : > { %s171_s24 = scalar_lea.sflag (!%p165_p12), [#allocation4], %s170_s22  ;;  %s174_s25 = scalar_lea.vmem (!%p165_p12), [#allocation3], %s355_s23 }
  0x30   : > { %489 = dma.done.wait (%p571_p7), %s171_s24, 128  }
  0x31   : > { %491 = vsyncadd (%p571_p7), %s171_s24, 4294967168  ;;  %p200_p9 = scmp.lt.s32.totalorder %s554_s16, 1  ;;  %p358_p8 = scmp.ne.s32.totalorder %s554_s16, 0 }
  0x32   : > { %vm212_vm0 = vcmask (!%p358_p8), 0   ;;  %v513_v0 = vmov (!%p358_p8), 0.0  }
  0x33   : > { %s201_s26 = scalar_select %p200_p9, %s554_s16, 1 }
  0x34   : > { %211 = sbr.rel (%p358_p8) target bundleno = 59 (0x3b), region = 40  ;;  %213 = vst.msk [vmem:[#allocation2] sm:$0x1] (!%p358_p8), %vm212_vm0, %v513_v0 }
  0x35   : > { %s356_s27 = sshll.u32 %s201_s26, 3 }
  0x36   : > { %s203_s29 = scalar_lea.vmem %s671_s0, %s356_s27  ;;  %s207_s5 = scalar_lea.vmem %s673_s2, %s356_s27 }
  0x3b PF: > { %v214_v1 = vld [vmem:[%s203_s29] sm:$0xff]  ;;  %vm219_vm1 = vcmask 261120   ;;  %v239_v8 = vlaneseq  ;;  %s359_s21 = sshll.u32 %s554_s16, 3  ;;  %vm246_vm5 = vcmask 7168   ;;  %vm259_vm6 = vcmask 0   ;;  %p360_p7 = scmp.ne.s32.totalorder %s554_s16, 1 }
  0x3c   : > { %v215_v2 = vld [vmem:[%s174_s25] sm:$0xff]  ;;  %v241_v16 = vstv %s359_s21  ;;  %v245_v34 = vld [vmem:[#allocation2] sm:$0x1] }
  0x3d   : > { %v217_v3 = vsub.f32 %v214_v1, %v215_v2  ;;  %v216_v12 = vld [vmem:[%s207_s5] sm:$0xff]  ;;  %v240_v14 = vshrl.u32 %v239_v8, 7 }
  0x3e   : > { %v230_v17 = vsub.f32 1.0, %v216_v12 }
  0x3f   : > { %v218_v4 = vmul.f32 %v217_v3, %v217_v3  ;;  %v242_v20 = vadd.s32 %v241_v16, %v240_v14 }
  0x41   : > { %v220_v5 = vsel %vm219_vm1, %v218_v4, 0.0  ;;  %vm243_vm4 = vcmp.lt.s32.totalorder %v242_v20, 16 }
  0x42   : > { %221 = vadd.xlane.f32.xlu0 %v220_v5 }
  0xcf   : > { %v222_v6 = vpop.xlane.xlu0 %221 }
  0xd0   : > { %414 = vrsqrt.f32 %v222_v6  ;;  %vm225_vm2 = vcmp.eq.f32.partialorder %v222_v6, inf  ;;  %v228_v10 = vand.u32 2147483648, %v222_v6  ;;  %vm227_vm3 = vcmp.eq.f32.partialorder %v222_v6, 0.0 }
  0xda   : > { %v415_v7 = vpop.eup %414 }
  0xdb   : > { %v224_v9 = vmul.f32 %v415_v7, %v222_v6 }
  0xdd   : > { %v226_v11 = vsel %vm225_vm2, %v222_v6, %v224_v9 }
  0xde   : > { %v229_v13 = vsel %vm227_vm3, %v228_v10, %v226_v11 }
  0xdf   : > { %v233_v15 = vsub.f32 0.2, %v229_v13  ;;  %v231_v18 = vmul.f32 %v229_v13, %v229_v13 }
  0xe1   : > { %v234_v19 = vmax.f32 %v233_v15, 0.0  ;;  %v232_v22 = vmul.f32 %v231_v18, %v230_v17 }
  0xe3   : > { %v235_v21 = vmul.f32 %v234_v19, %v234_v19 }
  0xe5   : > { %v236_v23 = vmul.f32 %v235_v21, %v216_v12 }
  0xe7   : > { %v237_v24 = vadd.f32 %v236_v23, %v232_v22 }
  0xe9   : > { %v244_v25 = vsel %vm243_vm4, %v237_v24, 0.0 }
  0xea   : > { %v247_v26 = vsel %vm246_vm5, %v244_v25, 0.0 }
  0xeb   : > { %248 = vadd.xlane.f32.xlu0 %v247_v26 }
 0x178   : > { %v249_v27 = vpop.xlane.xlu0 %248 }
 0x179   : > { %v250_v28 = vrot.slane %v249_v27, 4 }
 0x17b   : > { %v251_v29 = vadd.f32 %v250_v28, %v249_v27 }
 0x17d   : > { %v252_v30 = vrot.slane %v251_v29, 2 }
 0x17f   : > { %v253_v31 = vadd.f32 %v252_v30, %v251_v29 }
 0x181   : > { %v254_v32 = vrot.slane %v253_v31, 1 }
 0x183   : > { %v255_v33 = vadd.f32 %v254_v32, %v253_v31 }
 0x185   : > { %365 = vpush %v255_v33 }
 0x1b4   : > { %264 = sbr.rel (%p360_p7) target bundleno = 453 (0x1c5), region = 44 }
 0x1b6   : > { %s366_s6 = spop %365 }
 0x1b7   : > { %v257_v35 = vstv %s366_s6 }
 0x1b8   : > { %v258_v36 = vadd.f32 %v257_v35, %v245_v34 }
 0x1ba   : > { %260 = vst.msk [vmem:[#allocation2] sm:$0x1] %vm259_vm6, %v258_v36 }
 0x1c1   : > { %v265_v37 = vld [vmem:[#allocation2] sm:$0x1] }
 0x1c2   : > { %v266_v38 = vmul.f32 0.03125, %v265_v37 }
 0x1c4   : > { %267 = vst.msk [vmem:[#allocation6] sm:$0x1] %vm259_vm6, %v266_v38 }
 0x1c5 PF: > { %p378_p10 = scmp.eq.s32.totalorder %s554_s16, 1  ;;  %s514_s7 = smov [#allocation6]  }
 0x1c6   : > { %s275_s8 = sshll.u32 %s514_s7, 4  ;;  %s276_s8 = int_to_ptr.vmem [resolvable:$true] %s275_s8 }
 0x1c7   : > { %s446_s9 = scalar_lea.vmem %s276_s8, 16  ;;  %s452_s10 = scalar_lea.vmem %s276_s8, 32 }
 0x1c8   : > { %p447_p5 = scmp.ne.s32.totalorder %s276_s8, %s446_s9  ;;  %p453_p13 = scmp.lt.s32.totalorder %s276_s8, %s276_s8 }
 0x1c9   : > { %p454_p1 = scmp.lt.s32.totalorder %s452_s10, %s446_s9 }
 0x1ca   : > { %p448_p6 = pnand %p447_p5, %p378_p10 }
 0x1cb   : > { %p455_p2 = por %p454_p1, %p453_p13 }
 0x1cc   : > { %p449_p11 = pneg %p448_p6 }
 0x1ce   : > { %p456_p3 = pnand %p455_p2, %p449_p11 }
 0x1d0   : > { %459 = shalt.err (!%p456_p3)
}
 0x1d1   : > { %s460_s18 = scalar_lea.hbm %s674_s3, 16 }
 0x1d2   : > { %p461_p0 = scmp.ne.s32.totalorder %s674_s3, %s460_s18  ;;  %p466_p9 = scmp.lt.u32.totalorder %s460_s18, %s674_s3 }
 0x1d4   : > { %p462_p4 = pnand %p461_p0, %p378_p10 }
 0x1d6   : > { %p463_p12 = pneg %p462_p4 }
 0x1d8   : > { %p468_p8 = pnand %p466_p9, %p463_p12 }
 0x1da   : > { %471 = shalt.err (!%p468_p8)
}
 0x1db   : > { %370 = dma.vmem_to_hbm [thread:$0]  (%p378_p10), %s276_s8, 16, %s674_s3, [#allocation5]  }
 0x1dc   : > { %493 = dma.done.wait (%p378_p10), [#allocation5], 16  }
 0x1dd   : > { %495 = vsyncadd (%p378_p10), [#allocation5], 4294967280 }
 0x1de PF: > { %p14_p7 = scmp.ge.s32.totalorder %s557_s17, 4   ;;  %s679_s12 = smov %s502_s13 }
 0x1df   : > { %s680_s13 = smov %s506_s14  ;;  %s681_s14 = smov %s567_s20 }
 0x1e0   : > { %s682_s15 = smov %s557_s17  ;;  %16 = sbr.rel (!%p14_p7) target bundleno = 4 (0x4), region = 83 }
 0x1e7   :  { %288 = vsyncpa [#allocation4], 1 }
 0x1e8   :  { %290 = vsyncpa [#allocation4 + $0x1], 1 }
 0x1e9   :  { %291 = vsyncpa [#allocation5], 1 }
 0x1ea   :  { %293 = vsyncpa [#allocation5 + $0x1], 1 }

</bundles_post_ra>
